<compile_context>
chip_gen: v7x
topology: tpu7x:2x2x1
jax: 0.10.0
libtpu: 0.0.40
codegen_flags: <defaults>
</compile_context>

<pallas_src>
import jax
import jax.numpy as jnp
from jax import lax
from jax.experimental import pallas as pl
from jax.experimental.pallas import tpu as pltpu


# ----- fixed function set (mirrors funcs[i].torch) ---------------------------
SINGLE_FUNCS = (
    lambda z: z,                 # identity
    lambda z: z * z,             # square
    jnp.sin,                     # sin
    jax.nn.sigmoid,              # sigmoid
)
DOUBLE_FUNCS = (
    lambda a, b: a * b,          # product
)
N_SINGLE = len(SINGLE_FUNCS)     # 4
N_DOUBLE = len(DOUBLE_FUNCS)     # 1
N_FUNCS = N_SINGLE + N_DOUBLE    # 5
OUT_DIM = N_FUNCS + N_DOUBLE     # 6 (width of W's second axis)

_LANE = 128
_SUBLANE = 8


def _round_up(x, m):
    return ((x + m - 1) // m) * m


# ----- Pallas kernel ---------------------------------------------------------
def _symbolic_layer_kernel(x_ref, w_t_ref, o_ref):
    # x_ref:   (TILE_B, in_dim)  -- batch tile, native dtype straight from HBM
    # w_t_ref: (OUT_DIM, in_dim) -- W transposed; tiny, same block every step
    # o_ref:   (N_FUNCS, TILE_B) -- batch on lanes -> lane-dense stores
    #
    # g[f, b] = sum_k W[k, f] * x[b, k]  -> (OUT_DIM, TILE_B).  Both operands
    # contract on their last dim (A @ B^T form), which the MXU consumes
    # natively; accumulation is f32.
    g = lax.dot_general(
        w_t_ref[...], x_ref[...],
        dimension_numbers=(((1,), (1,)), ((), ())),
        preferred_element_type=jnp.float32,
    )

    # Per-row activations on single-sublane slices: the transcendentals (sin,
    # sigmoid) only touch the one row that needs them, each covering TILE_B
    # lanes densely.  Stores are lane-dense (TILE_B is a multiple of 128).
    o_ref[0:1, :] = g[0:1, :].astype(o_ref.dtype)                  # identity
    o_ref[1:2, :] = (g[1:2, :] * g[1:2, :]).astype(o_ref.dtype)    # square
    o_ref[2:3, :] = jnp.sin(g[2:3, :]).astype(o_ref.dtype)         # sin
    o_ref[3:4, :] = jax.nn.sigmoid(g[3:4, :]).astype(o_ref.dtype)  # sigmoid
    o_ref[4:5, :] = (g[4:5, :] * g[5:6, :]).astype(o_ref.dtype)    # product


# ----- wrapper ---------------------------------------------------------------
def symbolic_layer(x, w, *, target_tile_bytes=8 << 20, tile_b=None,
                   batch_major=True):
    """x: (B, in_dim), w: (in_dim, OUT_DIM)  ->  (B, N_FUNCS) (x.dtype).

    batch_major=False returns the kernel-native (N_FUNCS, B) layout and skips
    the extra HBM pass of the final transpose (use it if the consumer can).
    """
    B, in_dim = x.shape
    assert w.shape == (in_dim, OUT_DIM)

    # W is tiny; cast/transposing it costs nothing.  x is NOT touched.
    w_t = jnp.transpose(w).astype(x.dtype)                 # (OUT_DIM, in_dim)

    itemsize = jnp.dtype(x.dtype).itemsize
    padded_in = _round_up(in_dim, _LANE)                   # VMEM lane padding

    # --- tile size from a VMEM byte budget (padded layout), 128-aligned ------
    if tile_b is None:
        tile_b = (int(target_tile_bytes) // (padded_in * itemsize))
    tile_b = max(_LANE, (_round_up(int(tile_b), _LANE)))
    # keep at least 2 grid steps when possible (v7x has 2 TensorCores) and
    # never tile beyond the 128-rounded batch itself.
    tile_b = min(tile_b, max(_LANE, _round_up((B + 1) // 2, _LANE)))
    grid = (pl.cdiv(B, tile_b),)                           # ragged last block OK

    # --- VMEM budget with real (padded) layouts; double-buffered specs -------
    x_tile_vmem = tile_b * padded_in * itemsize
    out_tile_vmem = _round_up(N_FUNCS, _SUBLANE) * tile_b * itemsize
    w_vmem = _round_up(OUT_DIM, _SUBLANE) * padded_in * itemsize
    needed = 2 * (x_tile_vmem + out_tile_vmem + w_vmem)
    vmem_limit = max(4 << 20, min(32 << 20, int(1.5 * needed)),
                     needed + (1 << 20))
    vmem_limit = int(min(vmem_limit, 60 << 20))            # v7x: 64 MiB physical

    cost = pl.CostEstimate(
        flops=2 * B * in_dim * OUT_DIM,
        transcendentals=2 * B,                             # sin + sigmoid per row
        bytes_accessed=B * in_dim * itemsize + OUT_DIM * in_dim * itemsize
                       + N_FUNCS * B * itemsize,
    )

    out_t = pl.pallas_call(
        _symbolic_layer_kernel,
        out_shape=jax.ShapeDtypeStruct((N_FUNCS, B), x.dtype),
        grid=grid,
        in_specs=[
            pl.BlockSpec((tile_b, in_dim), lambda i: (i, 0)),    # x tile
            pl.BlockSpec((OUT_DIM, in_dim), lambda i: (0, 0)),   # W^T (whole)
        ],
        out_specs=pl.BlockSpec((N_FUNCS, tile_b), lambda i: (0, i)),
        compiler_params=pltpu.CompilerParams(
            dimension_semantics=("parallel",),
            vmem_limit_bytes=vmem_limit,
        ),
        cost_estimate=cost,
    )(x, w_t)

    # Module semantics: (B, N_FUNCS).
    return jnp.transpose(out_t) if batch_major else out_t


# ----- reference (plain JAX, f32) for correctness checks ---------------------
def _apply_funcs(g):
    outs = []
    in_i = 0
    for f in SINGLE_FUNCS:
        outs.append(f(g[:, in_i]))
        in_i += 1
    for f in DOUBLE_FUNCS:
        outs.append(f(g[:, in_i], g[:, in_i + 1]))
        in_i += 2
    return jnp.stack(outs, axis=1)


def symbolic_layer_ref(x, w):
    g = jnp.dot(x, w, precision=lax.Precision.HIGHEST,
                preferred_element_type=jnp.float32)
    return _apply_funcs(g)


if __name__ == "__main__":
    key = jax.random.PRNGKey(0)
    kx, kw = jax.random.split(key)

    B, IN_DIM = 8, 32
    INIT_STDDEV = 0.1

    x = jax.random.normal(kx, (B, IN_DIM), dtype=jnp.float32)
    # W = torch.normal(mean=0.0, std=init_stddev, size=(in_dim, out_dim))
    w = INIT_STDDEV * jax.random.normal(kw, (IN_DIM, OUT_DIM), dtype=jnp.float32)

    out = jax.block_until_ready(symbolic_layer(x, w))
    ref = symbolic_layer_ref(x, w)

    assert out.shape == (B, N_FUNCS), out.shape
    assert jnp.allclose(out, ref, atol=1e-2, rtol=1e-2), (
        jnp.max(jnp.abs(out - ref)))
    print("KERNEL_OK")
</pallas_src>

<mosaic_0001>
module attributes {stable_mosaic.version = 11 : i64} {
  func.func @_symbolic_layer_kernel(%arg0: i32, %arg1: memref<128x32xf32, #tpu.memory_space<vmem>>, %arg2: memref<6x32xf32, #tpu.memory_space<vmem>>, %arg3: memref<5x128xf32, #tpu.memory_space<vmem>>) attributes {dimension_semantics = [#tpu.dimension_semantics<parallel>], iteration_bounds = array<i64: 1>, scalar_prefetch = 0 : i64, scratch_operands = 0 : i64, tpu.core_type = #tpu.core_type<tc>, window_params = [{transform_indices = @transform_0, window_bounds = array<i64: 128, 32>}, {pipeline_mode = #tpu.pipeline_mode<synchronous>, transform_indices = @transform_1, window_bounds = array<i64: 6, 32>}, {transform_indices = @transform_2, window_bounds = array<i64: 5, 128>}]} {
    %c0 = arith.constant 0 : index
    %c0_0 = arith.constant 0 : index
    %0 = vector.load %arg2[%c0, %c0_0] : memref<6x32xf32, #tpu.memory_space<vmem>>, vector<6x32xf32>
    %c0_1 = arith.constant 0 : index
    %c0_2 = arith.constant 0 : index
    %1 = vector.load %arg1[%c0_1, %c0_2] : memref<128x32xf32, #tpu.memory_space<vmem>>, vector<128x32xf32>
    %cst = arith.constant dense<0.000000e+00> : vector<6x128xf32>
    %2 = tpu.matmul %0, %1, %cst {dimension_numbers = #tpu.dot_dimension_numbers<[1], [1], [0], [0], [0, 0, 1, 0], [], []>} : vector<6x32xf32>, vector<128x32xf32>, vector<6x128xf32> -> vector<6x128xf32>
    %3 = vector.extract_strided_slice %2 {offsets = [0, 0], sizes = [1, 128], strides = [1, 1]} : vector<6x128xf32> to vector<1x128xf32>
    %c0_3 = arith.constant 0 : index
    %c0_4 = arith.constant 0 : index
    %4 = vector.load %arg3[%c0_3, %c0_4] : memref<5x128xf32, #tpu.memory_space<vmem>>, vector<1x128xf32>
    tpu.vector_store %arg3[%c0_3, %c0_4], %3 {strides = array<i32>} : memref<5x128xf32, #tpu.memory_space<vmem>>, vector<1x128xf32>,
    %5 = vector.extract_strided_slice %2 {offsets = [1, 0], sizes = [1, 128], strides = [1, 1]} : vector<6x128xf32> to vector<1x128xf32>
    %6 = vector.extract_strided_slice %2 {offsets = [1, 0], sizes = [1, 128], strides = [1, 1]} : vector<6x128xf32> to vector<1x128xf32>
    %7 = arith.mulf %5, %6 : vector<1x128xf32>
    %c1 = arith.constant 1 : index
    %c0_5 = arith.constant 0 : index
    %8 = vector.load %arg3[%c1, %c0_5] : memref<5x128xf32, #tpu.memory_space<vmem>>, vector<1x128xf32>
    tpu.vector_store %arg3[%c1, %c0_5], %7 {strides = array<i32>} : memref<5x128xf32, #tpu.memory_space<vmem>>, vector<1x128xf32>,
    %9 = vector.extract_strided_slice %2 {offsets = [2, 0], sizes = [1, 128], strides = [1, 1]} : vector<6x128xf32> to vector<1x128xf32>
    %10 = math.sin %9 : vector<1x128xf32>
    %c2 = arith.constant 2 : index
    %c0_6 = arith.constant 0 : index
    %11 = vector.load %arg3[%c2, %c0_6] : memref<5x128xf32, #tpu.memory_space<vmem>>, vector<1x128xf32>
    tpu.vector_store %arg3[%c2, %c0_6], %10 {strides = array<i32>} : memref<5x128xf32, #tpu.memory_space<vmem>>, vector<1x128xf32>,
    %12 = vector.extract_strided_slice %2 {offsets = [3, 0], sizes = [1, 128], strides = [1, 1]} : vector<6x128xf32> to vector<1x128xf32>
    %13 = arith.negf %12 : vector<1x128xf32>
    %14 = math.exp %13 : vector<1x128xf32>
    %cst_7 = arith.constant 1.000000e+00 : f32
    %15 = vector.broadcast %cst_7 : f32 to vector<1x128xf32>
    %16 = arith.addf %15, %14 : vector<1x128xf32>
    %17 = arith.divf %15, %16 : vector<1x128xf32>
    %c3 = arith.constant 3 : index
    %c0_8 = arith.constant 0 : index
    %18 = vector.load %arg3[%c3, %c0_8] : memref<5x128xf32, #tpu.memory_space<vmem>>, vector<1x128xf32>
    tpu.vector_store %arg3[%c3, %c0_8], %17 {strides = array<i32>} : memref<5x128xf32, #tpu.memory_space<vmem>>, vector<1x128xf32>,
    %19 = vector.extract_strided_slice %2 {offsets = [4, 0], sizes = [1, 128], strides = [1, 1]} : vector<6x128xf32> to vector<1x128xf32>
    %20 = vector.extract_strided_slice %2 {offsets = [5, 0], sizes = [1, 128], strides = [1, 1]} : vector<6x128xf32> to vector<1x128xf32>
    %21 = arith.mulf %19, %20 : vector<1x128xf32>
    %c4 = arith.constant 4 : index
    %c0_9 = arith.constant 0 : index
    %22 = vector.load %arg3[%c4, %c0_9] : memref<5x128xf32, #tpu.memory_space<vmem>>, vector<1x128xf32>
    tpu.vector_store %arg3[%c4, %c0_9], %21 {strides = array<i32>} : memref<5x128xf32, #tpu.memory_space<vmem>>, vector<1x128xf32>,
    return
  }
  func.func @transform_0(%arg0: i32) -> (i32, i32) {
    %c0_i32 = arith.constant 0 : i32
    %c0_i32_0 = arith.constant 0 : i32
    return %arg0, %c0_i32 : i32, i32
  }
  func.func @transform_1(%arg0: i32) -> (i32, i32) {
    %c0_i32 = arith.constant 0 : i32
    %c0_i32_0 = arith.constant 0 : i32
    %c0_i32_1 = arith.constant 0 : i32
    return %c0_i32, %c0_i32_0 : i32, i32
  }
  func.func @transform_2(%arg0: i32) -> (i32, i32) {
    %c0_i32 = arith.constant 0 : i32
    %c0_i32_0 = arith.constant 0 : i32
    return %c0_i32, %arg0 : i32, i32
  }
}

</mosaic_0001>

<bundles_post_ra>
// kernel: tpu_custom_call.1
= control target key start
LH: loop header
LB: loop body
LE: loop exit
PB: predicated region body
PF: predicated region fallthrough
CT: control target
= control target key end

     0   :  { %7 = vsyncpa [#allocation3], 0  ;;  %s632_s0 = inlined_call_operand.hbm [shape: f32[8,32], index: 0, kind: input, shape index: {}]   ;;  %s633_s1 = inlined_call_operand.hbm [shape: f32[6,32], index: 1, kind: input, shape index: {}]   ;;  %s634_s2 = inlined_call_operand.hbm [shape: f32[5,8], index: 2, kind: output, shape index: {}]  }
   0x1   :  { %8 = vsyncpa [#allocation6], 0 }
   0x2   :  { %9 = vsyncpa [#allocation4], 0 }
   0x3   :  { %14 = vsyncadd [#allocation3], 1920  ;;  %s517_s9 = smov [#allocation2]   ;;  %s445_s13 = scalar_lea.hbm %s632_s0, 128 }
   0x4   :  { %s15_s10 = sshll.u32 %s517_s9, 4  ;;  %p446_p0 = scmp.ne.s32.totalorder %s632_s0, %s445_s13  ;;  %s16_s10 = int_to_ptr.vmem [resolvable:$true] %s15_s10 }
   0x5   :  { %p449_p1 = scmp.lt.u32.totalorder %s445_s13, %s632_s0 }
   0x7   :  { %p451_p2 = pnand %p449_p1, %p446_p0 }
   0x9   :  { %454 = shalt.err (!%p451_p2)
}
   0xa   :  { %s455_s18 = scalar_lea.vmem %s16_s10, 128  ;;  %s459_s19 = scalar_lea.vmem %s16_s10, 2048 }
   0xb   :  { %p456_p3 = scmp.ne.s32.totalorder %s16_s10, %s455_s18  ;;  %p460_p4 = scmp.lt.s32.totalorder %s16_s10, %s16_s10 }
   0xc   :  { %p461_p5 = scmp.lt.s32.totalorder %s459_s19, %s455_s18 }
   0xe   :  { %p462_p6 = por %p461_p5, %p460_p4 }
  0x10   :  { %p463_p7 = pnand %p462_p6, %p456_p3 }
  0x12   :  { %466 = shalt.err (!%p463_p7)
}
  0x13   :  { %s518_s20 = smov 128   ;;  %s519_s21 = smov 8  }
  0x14   :  { %21 = dma.hbm_to_vmem [thread:$0]  %s632_s0, 128, %s16_s10, [#allocation3], %s518_s20, %s518_s20, %s519_s21  }
  0x15   :  { %s520_s24 = smov [#allocation5]   ;;  %s467_s28 = scalar_lea.hbm %s633_s1, 128 }
  0x16   :  { %s28_s25 = sshll.u32 %s520_s24, 4  ;;  %p468_p8 = scmp.ne.s32.totalorder %s633_s1, %s467_s28  ;;  %s29_s25 = int_to_ptr.vmem [resolvable:$true] %s28_s25 }
  0x17   :  { %p471_p9 = scmp.lt.u32.totalorder %s467_s28, %s633_s1 }
  0x19   :  { %p473_p10 = pnand %p471_p9, %p468_p8 }
  0x1b   :  { %476 = shalt.err (!%p473_p10)
}
  0x1c   :  { %s477_s5 = scalar_lea.vmem %s29_s25, 128  ;;  %p482_p12 = scmp.lt.s32.totalorder %s29_s25, %s29_s25 }
  0x1d   :  { %p478_p11 = scmp.ne.s32.totalorder %s29_s25, %s477_s5  ;;  %p483_p13 = scmp.lt.s32.totalorder %s477_s5, %s477_s5 }
  0x1f   :  { %p484_p0 = por %p483_p13, %p482_p12 }
  0x21   :  { %p485_p1 = pnand %p484_p0, %p478_p11 }
  0x23   :  { %488 = shalt.err (!%p485_p1)
}
  0x24   :  { %31 = dma.hbm_to_vmem [thread:$0]  %s633_s1, 128, %s29_s25, [#allocation6]  }
  0x25   :  { %511 = dma.done.wait [#allocation3], 2048  }
  0x26   :  { %512 = vsyncadd [#allocation3], 4294965248 }
  0x27   :  { %513 = dma.done.wait [#allocation6], 128  }
  0x28   :  { %514 = vsyncadd [#allocation6], 4294967168  ;;  %v521_v0 = vmov 0.0|0.0   ;;  %vm522_vm0 = vmmov 0   ;;  %v523_v1 = vmov 0.0   ;;  %vm55_vm1 = vcmask 261120  }
  0x29   :  { %387 = vmatprep.subr.bf16.mxu0 %v521_v0  ;;  %384 = vmatprep.mubr.msk.f32.mxu0 %vm522_vm0, %v523_v1  ;;  %v39_v2 = vld [vmem:[#allocation2] sm:$0xff]  ;;  %v40_v3 = vld [vmem:[#allocation2 + $0x8] sm:$0xff]  ;;  %vm572_vm2 = vmpackc.low %vm55_vm1, %vm55_vm1  ;;  %v524_v46 = vmov 683565275   ;;  %v525_v48 = vmov 2475754826  }
  0x2a   :  { %v388_v5 = vpack.c.bf16 %v40_v3, %v39_v2  ;;  %v41_v6 = vld [vmem:[#allocation2 + $0x10] sm:$0xff]  ;;  %v42_v7 = vld [vmem:[#allocation2 + $0x18] sm:$0xff]  ;;  %v43_v9 = vld [vmem:[#allocation2 + $0x20] sm:$0xff]  ;;  %v526_v51 = vmov 2131351028   ;;  %s530_s1 = smov [#allocation7]  }
  0x2b   :  { %v392_v8 = vpack.c.bf16 %v42_v7, %v41_v6  ;;  %v44_v10 = vld [vmem:[#allocation2 + $0x28] sm:$0xff]  ;;  %v45_v12 = vld [vmem:[#allocation2 + $0x30] sm:$0xff]  ;;  %v46_v13 = vld [vmem:[#allocation2 + $0x38] sm:$0xff]  ;;  %v527_v54 = vmov 2102212464   ;;  %s303_s7 = sshll.u32 %s530_s1, 4  ;;  %s304_s7 = int_to_ptr.vmem [resolvable:$true] %s303_s7 }
  0x2c   :  { %390 = vmatpush3.bf16.xpose.msk.msra.mxu0 %vm572_vm2, %v388_v5  ;;  %v396_v11 = vpack.c.bf16 %v44_v10, %v43_v9  ;;  %v400_v14 = vpack.c.bf16 %v46_v13, %v45_v12  ;;  %v47_v15 = vld [vmem:[#allocation2 + $0x40] sm:$0xff]  ;;  %v48_v16 = vld [vmem:[#allocation2 + $0x48] sm:$0xff]  ;;  %v49_v18 = vld [vmem:[#allocation2 + $0x50] sm:$0xff]  ;;  %v528_v57 = vmov 920167782   ;;  %s489_s8 = scalar_lea.vmem %s304_s7, 128  ;;  %p494_p3 = scmp.lt.s32.totalorder %s304_s7, %s304_s7 }
  0x2d   :  { %391 = vmatprep.subr.bf16.mxu0 %v521_v0  ;;  %v404_v17 = vpack.c.bf16 %v48_v16, %v47_v15  ;;  %v50_v19 = vld [vmem:[#allocation2 + $0x58] sm:$0xff]  ;;  %v51_v21 = vld [vmem:[#allocation2 + $0x60] sm:$0xff]  ;;  %v52_v22 = vld [vmem:[#allocation2 + $0x68] sm:$0xff]  ;;  %v529_v60 = vmov 1326507024   ;;  %p490_p2 = scmp.ne.s32.totalorder %s304_s7, %s489_s8  ;;  %p495_p4 = scmp.lt.s32.totalorder %s489_s8, %s489_s8 }
  0x2e   :  { %v408_v20 = vpack.c.bf16 %v50_v19, %v49_v18  ;;  %v412_v23 = vpack.c.bf16 %v52_v22, %v51_v21  ;;  %v53_v24 = vld [vmem:[#allocation2 + $0x70] sm:$0xff]  ;;  %v54_v25 = vld [vmem:[#allocation2 + $0x78] sm:$0xff]  ;;  %v38_v27 = vld [vmem:[#allocation5] sm:$0x3f] }
  0x2f   :  { %v416_v26 = vpack.c.bf16 %v54_v25, %v53_v24  ;;  %p496_p5 = por %p495_p4, %p494_p3 }
  0x31   :  { %p497_p6 = pnand %p496_p5, %p490_p2 }
  0x34   :  { %394 = vmatpush3.bf16.xpose.msk.msra.mxu0 %vm572_vm2, %v392_v8 }
  0x35   :  { %395 = vmatprep.subr.bf16.mxu0 %v521_v0 }
  0x3c   :  { %398 = vmatpush3.bf16.xpose.msk.msra.mxu0 %vm572_vm2, %v396_v11 }
  0x3d   :  { %399 = vmatprep.subr.bf16.mxu0 %v521_v0 }
  0x44   :  { %402 = vmatpush3.bf16.xpose.msk.msra.mxu0 %vm572_vm2, %v400_v14 }
  0x45   :  { %403 = vmatprep.subr.bf16.mxu0 %v521_v0 }
  0x4c   :  { %406 = vmatpush3.bf16.xpose.msk.msra.mxu0 %vm572_vm2, %v404_v17 }
  0x4d   :  { %407 = vmatprep.subr.bf16.mxu0 %v521_v0 }
  0x54   :  { %410 = vmatpush3.bf16.xpose.msk.msra.mxu0 %vm572_vm2, %v408_v20 }
  0x55   :  { %411 = vmatprep.subr.bf16.mxu0 %v521_v0 }
  0x5c   :  { %414 = vmatpush3.bf16.xpose.msk.msra.mxu0 %vm572_vm2, %v412_v23 }
  0x5d   :  { %415 = vmatprep.subr.bf16.mxu0 %v521_v0 }
  0x64   :  { %418 = vmatpush3.bf16.xpose.msk.msra.mxu0 %vm572_vm2, %v416_v26 }
  0x6b   :  { %385 = vmatmul.mubr.msk.f32.vlgmr.msra.gmra.mrb[0].mxu0 %vm55_vm1, %v38_v27 }
 0x13e   :  { %v593_v28 = vpop.f32.mrb[0].mxu0 }
 0x13f   :  { %v183_v29 = vand.u32 2139095040, %v593_v28  ;;  %177 = vst [vmem:[#allocation7] sm:$0x1] %v593_v28  ;;  %v386_v30 = vpop.f32.mrb[1].mxu0  ;;  %v178_v31 = vmul.f32 %v593_v28, %v593_v28  ;;  %v334_v32 = vmul.f32 -1.442695, %v593_v28  ;;  %vm272_vm15 = vweird.f32 %v593_v28 }
 0x140   :  { %v293_v33 = vrot.slane %v593_v28, 1  ;;  %v180_v37 = vand.u32 2147483647, %v593_v28  ;;  %vm182_vm10 = vcmp.lt.s32.totalorder %v593_v28, 0 }
 0x141   :  { %v184_v34 = vshrl.u32 %v183_v29, 23  ;;  %179 = vst [vmem:[#allocation7] sm:$0x2] %v178_v31  ;;  %437 = vpow2.f32 %v334_v32 }
 0x142   :  { %v295_v35 = vmul.f32 %v293_v33, %v593_v28  ;;  %v187_v40 = vand.u32 8388607, %v180_v37  ;;  %vm181_vm11 = vcmp.le.f32.partialorder %v180_v37, 0.7853982 }
 0x143   :  { %v330_v36 = vadd.s32 4294967169, %v184_v34 }
 0x144   :  { %296 = vst [vmem:[#allocation7] sm:$0x10] %v295_v35  ;;  %v188_v45 = vor.u32 8388608, %v187_v40 }
 0x145   :  { %v190_v38 = vadd.s32 1, %v330_v36 }
 0x146   :  { %v228_v12 = vshll.u32 %v188_v45, 8 }
 0x147   :  { %vm191_vm3 = vcmp.gt.s32.totalorder %v190_v38, 0 }
 0x148   :  { %v192_v39 = vsel %vm191_vm3, %v190_v38, 0 }
 0x149   :  { %v194_v41 = vand.u32 31, %v192_v39  ;;  %v193_v44 = vshrl.u32 %v192_v39, 5 }
 0x14b   :  { %v195_v42 = vsub.s32 32, %v194_v41  ;;  %v438_v43 = vpop.eup %437  ;;  %v197_v47 = vshll.u32 %v524_v46, %v194_v41  ;;  %v200_v49 = vshll.u32 %v525_v48, %v194_v41  ;;  %v203_v53 = vshll.u32 %v526_v51, %v194_v41 }
 0x14c   :  { %v206_v56 = vshll.u32 %v527_v54, %v194_v41  ;;  %v209_v59 = vshll.u32 %v528_v57, %v194_v41  ;;  %v288_v1 = vadd.f32 1.0, %v438_v43  ;;  %vm212_vm4 = vcmp.lt.s32.totalorder %v193_v44, 1 }
 0x14d   :  { %v198_v50 = vshrl.u32 %v525_v48, %v195_v42  ;;  %v201_v52 = vshrl.u32 %v526_v51, %v195_v42  ;;  %v204_v55 = vshrl.u32 %v527_v54, %v195_v42  ;;  %v207_v58 = vshrl.u32 %v528_v57, %v195_v42 }
 0x14e   :  { %v210_v61 = vshrl.u32 %v529_v60, %v195_v42  ;;  %vm215_vm5 = vcmp.lt.s32.totalorder %v193_v44, 4  ;;  %v196_v4 = vshrl.u32 %v524_v46, %v195_v42  ;;  %vm214_vm6 = vcmp.lt.s32.totalorder %v193_v44, 3 }
 0x14f   :  { %v199_v62 = vor.u32 %v198_v50, %v197_v47  ;;  %v202_v63 = vor.u32 %v201_v52, %v200_v49  ;;  %v205_v0 = vor.u32 %v204_v55, %v203_v53  ;;  %v208_v2 = vor.u32 %v207_v58, %v206_v56 }
 0x150   :  { %v211_v3 = vor.u32 %v210_v61, %v209_v59  ;;  %439 = vrcp.f32 %v288_v1  ;;  %vm213_vm7 = vcmp.lt.s32.totalorder %v193_v44, 2 }
 0x151   :  { %v217_v5 = vsel %vm215_vm5, %v205_v0, 2102212464  ;;  %v220_v6 = vsel %vm212_vm4, %v199_v62, %v202_v63  ;;  %v224_v7 = vsel %vm212_vm4, %v202_v63, %v205_v0  ;;  %v221_v8 = vsel %vm215_vm5, %v208_v2, 920167782 }
 0x152   :  { %v225_v9 = vsel %vm215_vm5, %v211_v3, 1326507024  ;;  %v222_v10 = vsel %vm214_vm6, %v205_v0, %v221_v8  ;;  %v216_v13 = vsel %vm212_vm4, %v196_v4, %v199_v62  ;;  %v218_v14 = vsel %vm214_vm6, %v202_v63, %v217_v5 }
 0x153   :  { %v226_v11 = vsel %vm214_vm6, %v208_v2, %v225_v9  ;;  %v223_v15 = vsel %vm213_vm7, %v220_v6, %v222_v10  ;;  %v219_v21 = vsel %vm213_vm7, %v216_v13, %v218_v14 }
 0x154   :  { %v227_v16 = vsel %vm213_vm7, %v224_v7, %v226_v11  ;;  %v608_v19 = vmul.u32.u64.low %v228_v12, %v223_v15  ;;  %v609_v20 = vmul.u32.u64.high %v228_v12, %v223_v15, %v608_v19  ;;  %v235_v23 = vmul.u32 %v228_v12, %v219_v21 }
 0x155   :  { %v605_v17 = vmul.u32.u64.low %v228_v12, %v227_v16  ;;  %v606_v18 = vmul.u32.u64.high %v228_v12, %v227_v16, %v605_v17 }
 0x156   :  { %v238_v22 = vadd.s32 1, %v609_v20 }
 0x157   :  { %vm237_vm8 = vc.u32 %v606_v18, %v608_v19  ;;  %v236_v38 = vadd.s32 %v608_v19, %v606_v18 }
 0x158   :  { %v239_v24 = vsel %vm237_vm8, %v238_v22, %v609_v20 }
 0x159   :  { %v240_v26 = vadd.s32 %v239_v24, %v235_v23 }
 0x15a   :  { %v440_v25 = vpop.eup %439 }
 0x15b   :  { %291 = vst [vmem:[#allocation7] sm:$0x8] %v440_v25  ;;  %v241_v27 = vadd.s32 536870912, %v240_v26 }
 0x15d   :  { %v242_v29 = vshrl.u32 %v241_v27, 30 }
 0x15f   :  { %v243_v30 = vshll.u32 %v242_v29, 30  ;;  %v266_v50 = vsub.s32 4, %v242_v29 }
 0x161   :  { %v244_v31 = vsub.s32 %v240_v26, %v243_v30  ;;  %v267_v53 = vsel %vm182_vm10, %v266_v50, %v242_v29 }
 0x162   :  { %v269_v55 = vsel %vm181_vm11, 0, %v267_v53 }
 0x163   :  { %v246_v32 = vsub.s32 0, %v244_v31  ;;  %v273_v56 = vadd.s32 3, %v269_v55 }
 0x165   :  { %v331_v33 = vmin.u32 %v246_v32, %v244_v31  ;;  %v274_v57 = vand.u32 3, %v273_v56 }
 0x167   :  { %v248_v34 = vclz %v331_v33  ;;  %vm279_vm12 = vcmp.eq.s32.totalorder %v274_v57, 2  ;;  %vm276_vm13 = vcmp.eq.s32.totalorder %v274_v57, 0  ;;  %vm275_vm14 = vcmp.lt.s32.totalorder %v274_v57, 2 }
 0x169   :  { %v332_v35 = vadd.s32 4294967294, %v248_v34 }
 0x16b   :  { %vm333_vm9 = vcmp.lt.s32.totalorder %v332_v35, 0 }
 0x16c   :  { %v251_v36 = vsel %vm333_vm9, 0, %v332_v35 }
 0x16d   :  { %v252_v39 = vsub.s32 32, %v251_v36  ;;  %v256_v40 = vsub.s32 4294967266, %v251_v36  ;;  %v253_v41 = vshll.u32 %v244_v31, %v251_v36 }
 0x16f   :  { %v254_v42 = vshrl.u32 %v236_v38, %v252_v39  ;;  %v257_v43 = vadd.s32 127, %v256_v40 }
 0x171   :  { %v255_v44 = vor.u32 %v254_v42, %v253_v41  ;;  %v258_v45 = vshll.u32 %v257_v43, 23 }
 0x173   :  { %v259_v46 = vor.u32 4788187, %v258_v45  ;;  %v262_v48 = vcvt.s32.f32 %v255_v44 }
 0x175   :  { %v260_v47 = vand.u32 2147483647, %v259_v46 }
 0x177   :  { %v263_v49 = vmul.f32 %v262_v48, %v260_v47 }
 0x179   :  { %v264_v51 = vxor.u32 2147483648, %v263_v49 }
 0x17b   :  { %v265_v52 = vsel %vm182_vm10, %v264_v51, %v263_v49 }
 0x17c   :  { %v268_v54 = vsel %vm181_vm11, %v593_v28, %v265_v52 }
 0x17d   :  { %441 = vcosq.f32 %v268_v54 }
 0x17e   :  { %443 = vsinq.f32 %v268_v54 }
 0x187   :  { %v442_v58 = vpop.eup %441 }
 0x188   :  { %v444_v59 = vpop.eup %443  ;;  %v280_v60 = vxor.u32 2147483648, %v442_v58 }
 0x189   :  { %v277_v61 = vxor.u32 2147483648, %v444_v59 }
 0x18a   :  { %v281_v62 = vsel %vm279_vm12, %v280_v60, %v444_v59 }
 0x18b   :  { %v278_v37 = vsel %vm276_vm13, %v442_v58, %v277_v61 }
 0x18c   :  { %v282_v63 = vsel %vm275_vm14, %v278_v37, %v281_v62 }
 0x18d   :  { %v283_v0 = vsel %vm272_vm15, nan, %v282_v63 }
 0x18e   :  { %284 = vst [vmem:[#allocation7] sm:$0x4] %v283_v0 }
 0x18f   :  { %500 = shalt.err (!%p497_p6)
}
 0x190   :  { %s501_s11 = scalar_lea.hbm %s634_s2, 128 }
 0x191   :  { %p502_p7 = scmp.ne.s32.totalorder %s634_s2, %s501_s11  ;;  %p505_p8 = scmp.lt.u32.totalorder %s501_s11, %s634_s2 }
 0x193   :  { %p507_p9 = pnand %p505_p8, %p502_p7 }
 0x195   :  { %510 = shalt.err (!%p507_p9)
}
 0x196   :  { %306 = dma.vmem_to_hbm [thread:$0]  %s304_s7, 128, %s634_s2, [#allocation4]  }
 0x197   :  { %515 = dma.done.wait [#allocation4], 128  }
 0x198   :  { %516 = vsyncadd [#allocation4], 4294967168 }
 0x199   :  { %310 = vsyncpa [#allocation3], 1 }
 0x19a   :  { %311 = vsyncpa [#allocation6], 1 }
 0x19b   :  { %312 = vsyncpa [#allocation4], 1 }

</bundles_post_ra>
